<compile_context>
chip_gen: v6e
topology: v6e:2x2x1
jax: 0.10.0
libtpu: 0.0.40
codegen_flags: <defaults>
</compile_context>

<pallas_src>
import functools

import jax
import jax.numpy as jnp
from jax import lax
from jax.experimental import pallas as pl
from jax.experimental.pallas import tpu as pltpu


# --------------------------------------------------------------------------- kernel

def _saba_task_kernel(feat_s_ref, oh_s_ref, feat_q_ref, oh_q_ref,
                      wz_in_ref, bz_in_ref,
                      wz_ref, bz_ref, stats_ref, dpre_ref,
                      *, C, bs, inner_lr, nu, reg, n_chunks, training):
    """One grid step == one meta-learning task, fully fused:
       support sweep (inner-loss grads + HVP against z), inner SGD step,
       query forward + CE, Fy, z-update, and the per-row meta-backward terms."""
    t = pl.program_id(0)

    # VMEM-resident carries (constant-index output blocks): seed from the inputs once.
    @pl.when(t == 0)
    def _():
        wz_ref[...] = wz_in_ref[...]
        bz_ref[...] = bz_in_ref[...]

    wz = wz_ref[...]                            # (2C, H): rows [0:C]=Wa, [C:2C]=zw
    bz = bz_ref[...]                            # (2, C):  row 0 = ba, row 1 = zb
    wa, zw = wz[:C, :], wz[C:, :]
    ba, zb = bz[0:1, :], bz[1:2, :]

    n_sup = feat_s_ref.shape[0]
    n_q = feat_q_ref.shape[0]
    inv_bs = 1.0 / bs
    inv_bq = 1.0 / n_q
    reg2 = 2.0 * reg * n_chunks                 # reg term added once per support chunk

    # ---- support sweep: whole support set in one block --------------------------------
    feat_s = feat_s_ref[...]                    # (n_sup, H) meta features (hoisted to XLA)
    oh_s = oh_s_ref[...]                        # (n_sup, C)

    logits_s = lax.dot_general(feat_s, wa, (((1,), (1,)), ((), ())),
                               preferred_element_type=jnp.float32) + ba
    mx_s = jnp.max(logits_s, axis=-1, keepdims=True)
    e_s = jnp.exp(logits_s - mx_s)
    probs_s = e_s * pl.reciprocal(jnp.sum(e_s, axis=-1, keepdims=True), approx=True)

    # d(inner_loss)/d(adapter):  inner_loss = sum_chunks[mean CE] + n_chunks*reg*||.||^2
    dlog_s = (probs_s - oh_s) * inv_bs
    gwa = lax.dot_general(dlog_s, feat_s, (((0,), (0,)), ((), ())),
                          preferred_element_type=jnp.float32) + reg2 * wa
    gba = jnp.sum(dlog_s, axis=0, keepdims=True) + reg2 * ba

    # Hessian-vector product of the inner loss against z = (zw, zb)  (torch jvp)
    u_s = lax.dot_general(feat_s, zw, (((1,), (1,)), ((), ())),
                          preferred_element_type=jnp.float32) + zb
    dp_s = probs_s * (u_s - jnp.sum(probs_s * u_s, axis=-1, keepdims=True)) * inv_bs
    hwa = lax.dot_general(dp_s, feat_s, (((0,), (0,)), ((), ())),
                          preferred_element_type=jnp.float32) + reg2 * zw
    hba = jnp.sum(dp_s, axis=0, keepdims=True) + reg2 * zb

    # ---- inner_optimizer.step() --------------------------------------------------------
    wa_n = wa - inner_lr * gwa
    ba_n = ba - inner_lr * gba

    # ---- query pass --------------------------------------------------------------------
    feat_q = feat_q_ref[...]                    # (n_q, H)
    oh_q = oh_q_ref[...]                        # (n_q, C)
    logits_q = lax.dot_general(feat_q, wa_n, (((1,), (1,)), ((), ())),
                               preferred_element_type=jnp.float32) + ba_n
    mx_q = jnp.max(logits_q, axis=-1, keepdims=True)
    e_q = jnp.exp(logits_q - mx_q)
    s_q = jnp.sum(e_q, axis=-1, keepdims=True)
    probs_q = e_q * pl.reciprocal(s_q, approx=True)
    logp_q = (logits_q - mx_q) - jnp.log(s_q)
    q_loss = jnp.sum(-jnp.sum(oh_q * logp_q, axis=-1, keepdims=True),
                     axis=0, keepdims=True) * inv_bq                     # (1, 1)

    # probs + scalar loss ride in one packed output slab (no standalone (1,1) blocks)
    stats_ref[...] = jnp.concatenate(
        [probs_q, jnp.broadcast_to(q_loss, (1, C))], axis=0)

    dlog_q = (probs_q - oh_q) * inv_bq

    # Fy: grad of the query loss wrt the post-step adapter params (no reg on q_loss)
    fw = lax.dot_general(dlog_q, feat_q, (((0,), (0,)), ((), ())),
                         preferred_element_type=jnp.float32)
    fb = jnp.sum(dlog_q, axis=0, keepdims=True)

    # ---- hypergradient(): z_params <- z_params - nu * (jvp - Fy) -----------------------
    if training:
        zw_n = zw - nu * (hwa - fw)
        zb_n = zb - nu * (hba - fb)
    else:
        zw_n = zw
        zb_n = zb

    # carried state for the next task (written back to HBM only once, at grid end)
    wz_ref[...] = jnp.concatenate([wa_n, zw_n], axis=0)
    bz_ref[...] = jnp.concatenate([ba_n, zb_n], axis=0)

    # ---- meta-backward per-row terms (contracted against pooled features in XLA) -------
    # Fx (query part): dL_q/dfeat back through tanh of the meta model.
    dfeat_q = jnp.dot(dlog_q, wa_n, preferred_element_type=jnp.float32)   # (n_q, H)
    dpre_q = dfeat_q * (1.0 - feat_q * feat_q)

    # Gyxz: d/d(meta) of -(Gy(post-step adapter; last support mini-batch) . z_new)
    feat_l = feat_s[n_sup - bs:, :]
    oh_l = oh_s[n_sup - bs:, :]
    logits_l = lax.dot_general(feat_l, wa_n, (((1,), (1,)), ((), ())),
                               preferred_element_type=jnp.float32) + ba_n
    mx_l = jnp.max(logits_l, axis=-1, keepdims=True)
    e_l = jnp.exp(logits_l - mx_l)
    probs_l = e_l * pl.reciprocal(jnp.sum(e_l, axis=-1, keepdims=True), approx=True)
    dlog_l = (probs_l - oh_l) * inv_bs
    u_l = lax.dot_general(feat_l, zw_n, (((1,), (1,)), ((), ())),
                          preferred_element_type=jnp.float32) + zb_n
    dp_l = probs_l * (u_l - jnp.sum(probs_l * u_l, axis=-1, keepdims=True)) * inv_bs
    dphi_dfeat = (jnp.dot(dp_l, wa_n, preferred_element_type=jnp.float32)
                  + jnp.dot(dlog_l, zw_n, preferred_element_type=jnp.float32))
    dpre_l = dphi_dfeat * (1.0 - feat_l * feat_l)    # Gyxz_Wm = -(dpre_l^T @ pooled_l)

    dpre_ref[...] = jnp.concatenate([dpre_q, dpre_l], axis=0)


# -------------------------------------------------------------------------- wrapper

def _saba_all_tasks(feat_s, oh_s, feat_q, oh_q, wz0, bz0, *,
                    bs, inner_lr, nu, reg, n_chunks, training):
    T, n_sup, H = feat_s.shape
    C = oh_s.shape[-1]
    n_q = feat_q.shape[1]

    grid_spec = pltpu.PrefetchScalarGridSpec(
        num_scalar_prefetch=0,
        grid=(T,),
        in_specs=[
            pl.BlockSpec((None, n_sup, H), lambda t: (t, 0, 0)),   # support features
            pl.BlockSpec((None, n_sup, C), lambda t: (t, 0, 0)),   # support one-hots
            pl.BlockSpec((None, n_q, H), lambda t: (t, 0, 0)),     # query features
            pl.BlockSpec((None, n_q, C), lambda t: (t, 0, 0)),     # query one-hots
            pl.BlockSpec((2 * C, H), lambda t: (0, 0)),            # packed {Wa, zw}
            pl.BlockSpec((2, C), lambda t: (0, 0)),                # packed {ba, zb}
        ],
        out_specs=(
            pl.BlockSpec((2 * C, H), lambda t: (0, 0)),            # packed {Wa, zw} carry
            pl.BlockSpec((2, C), lambda t: (0, 0)),                # packed {ba, zb} carry
            pl.BlockSpec((None, n_q + 1, C), lambda t: (t, 0, 0)), # {q_probs, q_loss}
            pl.BlockSpec((None, n_q + bs, H), lambda t: (t, 0, 0)),# {dpre_q, dpre_Gyxz}
        ),
    )
    return pl.pallas_call(
        functools.partial(_saba_task_kernel, C=C, bs=bs,
                          inner_lr=float(inner_lr), nu=float(nu),
                          reg=float(reg), n_chunks=float(n_chunks),
                          training=bool(training)),
        grid_spec=grid_spec,
        out_shape=(
            jax.ShapeDtypeStruct((2 * C, H), jnp.float32),
            jax.ShapeDtypeStruct((2, C), jnp.float32),
            jax.ShapeDtypeStruct((T, n_q + 1, C), jnp.float32),
            jax.ShapeDtypeStruct((T, n_q + bs, H), jnp.float32),
        ),
        # in-place parameter carry: the {Wa,zw} / {ba,zb} slabs alias their outputs
        input_output_aliases={4: 0, 5: 1},
        # serial carry of adapter/z across tasks -> single "arbitrary" grid axis.
        # TODO(synk): no megacore task split on v7x because the torch reference carries
        #             the adapter and z state serially from task to task.
        compiler_params=pltpu.CompilerParams(dimension_semantics=("arbitrary",)),
    )(feat_s, oh_s, feat_q, oh_q, wz0, bz0)


# -------------------------------------------------------------------------- Learner

class Args:
    hidden_size = 32
    num_labels = 4
    inner_batch_size = 8
    outer_update_lr = 0.1
    inner_update_lr = 0.1
    nu = 0.01
    vocab_size = 50
    seq_len = 8
    methods = "saba"


class Learner:
    """Meta Learner (Pallas/TPU reimplementation of methods/saba.py::Learner)."""

    def __init__(self, args, key):
        self.args = args
        self.num_labels = args.num_labels
        self.inner_batch_size = args.inner_batch_size
        self.outer_update_lr = args.outer_update_lr
        self.inner_update_lr = args.inner_update_lr
        self.reg_const = 0.0001

        H, C, V = args.hidden_size, args.num_labels, args.vocab_size
        keys = jax.random.split(key, 4)
        # synthetic meta model: fixed embedding table + trainable tanh(Linear(H,H))
        self.emb_table = 0.02 * jax.random.normal(keys[0], (V, H), jnp.float32)
        self.Wm = jax.random.normal(keys[1], (H, H), jnp.float32) / jnp.sqrt(H)
        self.bm = jnp.zeros((1, H), jnp.float32)
        # adapter model: Linear(H, C), torch layout (out, in)
        self.Wa = jax.random.normal(keys[2], (C, H), jnp.float32) / jnp.sqrt(H)
        self.ba = jnp.zeros((1, C), jnp.float32)
        # z_params: xavier_uniform((param_count, 1)) -> stored structured / lane-dense
        param_count = C * H + C
        limit = (6.0 / (param_count + 1)) ** 0.5
        z0 = jax.random.uniform(keys[3], (param_count, 1), jnp.float32, -limit, limit)
        self.zw = z0[:C * H, 0].reshape(C, H)
        self.zb = z0[C * H:, 0].reshape(1, C)

        self._fwd = jax.jit(self._forward_impl, static_argnames=("training",))

    @property
    def z_params(self):
        # (P, 1) flat view for external inspection only (not on the hot path)
        return jnp.concatenate([self.zw.reshape(-1), self.zb.reshape(-1)]).reshape(-1, 1)

    def _forward_impl(self, Wm, bm, Wa, ba, zw, zb, emb_table,
                      sup_ids, sup_mask, sup_labels, q_ids, q_mask, q_labels,
                      training):
        C = self.num_labels
        bs = self.inner_batch_size
        T, n_sup, _ = sup_ids.shape
        n_q = q_ids.shape[1]
        # TODO(synk): torch DataLoader can emit a smaller final mini-batch; here n_sup
        #             must be a multiple of inner_batch_size (equal-size chunks), and the
        #             RandomSampler shuffling is replaced by deterministic ordering.
        assert n_sup % bs == 0
        n_chunks = n_sup // bs

        # masked mean pool + meta-model forward, batched over ALL rows of ALL tasks in
        # XLA (fuses with the embedding gather; keeps the MXU fed with one big matmul).
        def pool_and_feat(ids, mask):
            emb = jnp.take(emb_table, ids, axis=0)                 # (T, n, S, H)
            m = mask.astype(jnp.float32)[..., None]                # (T, n, S, 1)
            cnt = jnp.maximum(jnp.sum(m, axis=2), 1.0)             # (T, n, 1)
            pooled = jnp.sum(emb * m, axis=2) / cnt                # (T, n, H)
            feat = jnp.tanh(jnp.einsum("tnh,oh->tno", pooled, Wm) + bm)
            return pooled, feat

        pooled_s, feat_s = pool_and_feat(sup_ids, sup_mask)
        pooled_q, feat_q = pool_and_feat(q_ids, q_mask)
        oh_s = jax.nn.one_hot(sup_labels, C, dtype=jnp.float32)
        oh_q = jax.nn.one_hot(q_labels, C, dtype=jnp.float32)

        # packed lane-dense parameter slabs, carried inside the kernel across tasks
        wz0 = jnp.concatenate([Wa, zw], axis=0)                    # (2C, H)
        bz0 = jnp.concatenate([ba, zb], axis=0)                    # (2, C)

        wz1, bz1, stats, dpre = _saba_all_tasks(
            feat_s, oh_s, feat_q, oh_q, wz0, bz0,
            bs=bs, inner_lr=self.inner_update_lr, nu=self.args.nu,
            reg=self.reg_const, n_chunks=n_chunks, training=training)

        Wa_new, zw_new = wz1[:C, :], wz1[C:, :]
        ba_new, zb_new = bz1[0:1, :], bz1[1:2, :]
        q_probs = stats[:, :n_q, :]
        q_loss = stats[:, n_q, 0]

        preds = jnp.argmax(q_probs, axis=-1)
        acc = jnp.mean((preds == q_labels).astype(jnp.float32))
        loss = jnp.mean(q_loss)

        if training:
            # outer_optimizer.step(): hyper_grad = Fx(query) + Gyxz, averaged over tasks;
            # the (dpre^T @ pooled) contractions run batched over all tasks here.
            # TODO(synk): the torch reference also leaks d(inner_loss)/d(meta) into Fx
            #             because meta grads are not zeroed between the two backwards;
            #             that accumulation artifact is not reproduced.
            dpre_q = dpre[:, :n_q, :]
            dpre_l = dpre[:, n_q:, :]
            pooled_l = pooled_s[:, n_sup - bs:, :]
            gWm = (jnp.einsum("tno,tni->oi", dpre_q, pooled_q)
                   - jnp.einsum("tno,tni->oi", dpre_l, pooled_l)) / float(T)
            gbm = ((jnp.sum(dpre_q, axis=(0, 1)) - jnp.sum(dpre_l, axis=(0, 1)))
                   / float(T))[None, :]
            Wm = Wm - self.outer_update_lr * gWm
            bm = bm - self.outer_update_lr * gbm

        return Wm, bm, Wa_new, ba_new, zw_new, zb_new, acc, loss

    def forward(self, batch_tasks, training=True, step=0, epoch=0):
        sup_ids = jnp.stack([t["support"]["input_ids"] for t in batch_tasks])
        sup_mask = jnp.stack([t["support"]["attention_mask"] for t in batch_tasks])
        sup_labels = jnp.stack([t["support"]["labels"] for t in batch_tasks])
        q_ids = jnp.stack([t["query"]["input_ids"] for t in batch_tasks])
        q_mask = jnp.stack([t["query"]["attention_mask"] for t in batch_tasks])
        q_labels = jnp.stack([t["query"]["labels"] for t in batch_tasks])

        (self.Wm, self.bm, self.Wa, self.ba, self.zw, self.zb,
         acc, loss) = self._fwd(
            self.Wm, self.bm, self.Wa, self.ba, self.zw, self.zb, self.emb_table,
            sup_ids, sup_mask, sup_labels, q_ids, q_mask, q_labels,
            training=training)
        return acc, loss


# ------------------------------------------------------------------------------ main

if __name__ == "__main__":
    args = Args()
    key = jax.random.PRNGKey(0)
    k_model, k_data = jax.random.split(key)

    learner = Learner(args, k_model)

    def make_split(k, n):
        k1, k2, k3 = jax.random.split(k, 3)
        ids = jax.random.randint(k1, (n, args.seq_len), 0, args.vocab_size, dtype=jnp.int32)
        lengths = jax.random.randint(k2, (n,), 4, args.seq_len + 1, dtype=jnp.int32)
        mask = (jnp.arange(args.seq_len)[None, :] < lengths[:, None]).astype(jnp.float32)
        labels = jax.random.randint(k3, (n,), 0, args.num_labels, dtype=jnp.int32)
        return {"input_ids": ids, "attention_mask": mask, "labels": labels}

    tk = jax.random.split(k_data, 4)
    batch_tasks = [
        {"support": make_split(tk[0], 16), "query": make_split(tk[1], 8)},
        {"support": make_split(tk[2], 16), "query": make_split(tk[3], 8)},
    ]

    acc, loss = learner.forward(batch_tasks, training=True)
    jax.block_until_ready((acc, loss, learner.zw, learner.zb, learner.Wm, learner.Wa))
    print("KERNEL_OK")
</pallas_src>

<mosaic_0001>
module attributes {stable_mosaic.version = 11 : i64} {
  func.func @_saba_task_kernel(%arg0: i32, %arg1: memref<1x16x32xf32, #tpu.memory_space<vmem>>, %arg2: memref<1x16x4xf32, #tpu.memory_space<vmem>>, %arg3: memref<1x8x32xf32, #tpu.memory_space<vmem>>, %arg4: memref<1x8x4xf32, #tpu.memory_space<vmem>>, %arg5: memref<8x32xf32, #tpu.memory_space<vmem>>, %arg6: memref<2x4xf32, #tpu.memory_space<vmem>>, %arg7: memref<8x32xf32, #tpu.memory_space<vmem>>, %arg8: memref<2x4xf32, #tpu.memory_space<vmem>>, %arg9: memref<1x9x4xf32, #tpu.memory_space<vmem>>, %arg10: memref<1x16x32xf32, #tpu.memory_space<vmem>>) attributes {dimension_semantics = [#tpu.dimension_semantics<arbitrary>], iteration_bounds = array<i64: 2>, scalar_prefetch = 0 : i64, scratch_operands = 0 : i64, tpu.core_type = #tpu.core_type<tc>, window_params = [{transform_indices = @transform_0, window_bounds = array<i64: 1, 16, 32>}, {transform_indices = @transform_1, window_bounds = array<i64: 1, 16, 4>}, {transform_indices = @transform_2, window_bounds = array<i64: 1, 8, 32>}, {transform_indices = @transform_3, window_bounds = array<i64: 1, 8, 4>}, {pipeline_mode = #tpu.pipeline_mode<synchronous>, transform_indices = @transform_4, window_bounds = array<i64: 8, 32>}, {pipeline_mode = #tpu.pipeline_mode<synchronous>, transform_indices = @transform_5, window_bounds = array<i64: 2, 4>}, {pipeline_mode = #tpu.pipeline_mode<synchronous>, transform_indices = @transform_6, window_bounds = array<i64: 8, 32>}, {pipeline_mode = #tpu.pipeline_mode<synchronous>, transform_indices = @transform_7, window_bounds = array<i64: 2, 4>}, {transform_indices = @transform_8, window_bounds = array<i64: 1, 9, 4>}, {transform_indices = @transform_9, window_bounds = array<i64: 1, 16, 32>}]} {
    %c0_i32 = arith.constant 0 : i32
    %0 = arith.cmpi eq, %arg0, %c0_i32 : i32
    %1 = arith.extui %0 : i1 to i32
    %c0_i32_0 = arith.constant 0 : i32
    %2 = arith.cmpi ne, %1, %c0_i32_0 : i32
    scf.if %2 {
      %c0_66 = arith.constant 0 : index
      %c0_67 = arith.constant 0 : index
      %164 = vector.load %arg5[%c0_66, %c0_67] : memref<8x32xf32, #tpu.memory_space<vmem>>, vector<8x32xf32>
      %c0_68 = arith.constant 0 : index
      %c0_69 = arith.constant 0 : index
      %165 = vector.load %arg7[%c0_68, %c0_69] : memref<8x32xf32, #tpu.memory_space<vmem>>, vector<8x32xf32>
      tpu.vector_store %arg7[%c0_68, %c0_69], %164 {strides = array<i32>} : memref<8x32xf32, #tpu.memory_space<vmem>>, vector<8x32xf32>,
      %c0_70 = arith.constant 0 : index
      %c0_71 = arith.constant 0 : index
      %166 = vector.load %arg6[%c0_70, %c0_71] : memref<2x4xf32, #tpu.memory_space<vmem>>, vector<2x4xf32>
      %c0_72 = arith.constant 0 : index
      %c0_73 = arith.constant 0 : index
      %167 = vector.load %arg8[%c0_72, %c0_73] : memref<2x4xf32, #tpu.memory_space<vmem>>, vector<2x4xf32>
      tpu.vector_store %arg8[%c0_72, %c0_73], %166 {strides = array<i32>} : memref<2x4xf32, #tpu.memory_space<vmem>>, vector<2x4xf32>,
    } else {
    }
    %c0 = arith.constant 0 : index
    %c0_1 = arith.constant 0 : index
    %3 = vector.load %arg7[%c0, %c0_1] : memref<8x32xf32, #tpu.memory_space<vmem>>, vector<8x32xf32>
    %c0_2 = arith.constant 0 : index
    %c0_3 = arith.constant 0 : index
    %4 = vector.load %arg8[%c0_2, %c0_3] : memref<2x4xf32, #tpu.memory_space<vmem>>, vector<2x4xf32>
    %5 = vector.extract_strided_slice %3 {offsets = [0, 0], sizes = [4, 32], strides = [1, 1]} : vector<8x32xf32> to vector<4x32xf32>
    %6 = vector.extract_strided_slice %3 {offsets = [4, 0], sizes = [4, 32], strides = [1, 1]} : vector<8x32xf32> to vector<4x32xf32>
    %7 = vector.extract_strided_slice %4 {offsets = [0, 0], sizes = [1, 4], strides = [1, 1]} : vector<2x4xf32> to vector<1x4xf32>
    %8 = vector.extract_strided_slice %4 {offsets = [1, 0], sizes = [1, 4], strides = [1, 1]} : vector<2x4xf32> to vector<1x4xf32>
    %c0_4 = arith.constant 0 : index
    %c0_5 = arith.constant 0 : index
    %c0_6 = arith.constant 0 : index
    %9 = vector.load %arg1[%c0_4, %c0_5, %c0_6] : memref<1x16x32xf32, #tpu.memory_space<vmem>>, vector<1x16x32xf32>
    %10 = vector.shape_cast %9 : vector<1x16x32xf32> to vector<16x32xf32>
    %c0_7 = arith.constant 0 : index
    %c0_8 = arith.constant 0 : index
    %c0_9 = arith.constant 0 : index
    %11 = vector.load %arg2[%c0_7, %c0_8, %c0_9] : memref<1x16x4xf32, #tpu.memory_space<vmem>>, vector<1x16x4xf32>
    %12 = vector.shape_cast %11 : vector<1x16x4xf32> to vector<16x4xf32>
    %cst = arith.constant dense<0.000000e+00> : vector<16x4xf32>
    %13 = tpu.matmul %10, %5, %cst {dimension_numbers = #tpu.dot_dimension_numbers<[1], [1], [0], [0], [0, 0, 1, 0], [], []>} : vector<16x32xf32>, vector<4x32xf32>, vector<16x4xf32> -> vector<16x4xf32>
    %14 = vector.broadcast %7 : vector<1x4xf32> to vector<16x4xf32>
    %15 = arith.addf %13, %14 : vector<16x4xf32>
    %cst_10 = arith.constant dense<0xFF800000> : vector<16xf32>
    %16 = vector.multi_reduction <maximumf>, %15, %cst_10 [1] : vector<16x4xf32> to vector<16xf32>
    %17 = vector.shape_cast %16 : vector<16xf32> to vector<16x1xf32>
    %18 = vector.broadcast %17 : vector<16x1xf32> to vector<16x4xf32>
    %19 = arith.subf %15, %18 : vector<16x4xf32>
    %20 = math.exp %19 : vector<16x4xf32>
    %cst_11 = arith.constant dense<0.000000e+00> : vector<16xf32>
    %21 = vector.multi_reduction <add>, %20, %cst_11 [1] : vector<16x4xf32> to vector<16xf32>
    %22 = vector.shape_cast %21 : vector<16xf32> to vector<16x1xf32>
    %23 = tpu.reciprocal %22 {approx = true} : vector<16x1xf32> -> vector<16x1xf32>
    %24 = vector.broadcast %23 : vector<16x1xf32> to vector<16x4xf32>
    %25 = arith.mulf %20, %24 : vector<16x4xf32>
    %26 = arith.subf %25, %12 : vector<16x4xf32>
    %cst_12 = arith.constant 1.250000e-01 : f32
    %27 = vector.broadcast %cst_12 : f32 to vector<16x4xf32>
    %28 = arith.mulf %26, %27 : vector<16x4xf32>
    %cst_13 = arith.constant dense<0.000000e+00> : vector<4x32xf32>
    %29 = tpu.matmul %28, %10, %cst_13 {dimension_numbers = #tpu.dot_dimension_numbers<[0], [0], [1], [1], [0, 1, 1, 1], [], []>} : vector<16x4xf32>, vector<16x32xf32>, vector<4x32xf32> -> vector<4x32xf32>
    %cst_14 = arith.constant 4.000000e-04 : f32
    %30 = vector.broadcast %cst_14 : f32 to vector<4x32xf32>
    %31 = arith.mulf %30, %5 : vector<4x32xf32>
    %32 = arith.addf %29, %31 : vector<4x32xf32>
    %cst_15 = arith.constant dense<0.000000e+00> : vector<4xf32>
    %33 = vector.multi_reduction <add>, %28, %cst_15 [0] : vector<16x4xf32> to vector<4xf32>
    %34 = vector.shape_cast %33 : vector<4xf32> to vector<1x4xf32>
    %cst_16 = arith.constant 4.000000e-04 : f32
    %35 = vector.broadcast %cst_16 : f32 to vector<1x4xf32>
    %36 = arith.mulf %35, %7 : vector<1x4xf32>
    %37 = arith.addf %34, %36 : vector<1x4xf32>
    %cst_17 = arith.constant dense<0.000000e+00> : vector<16x4xf32>
    %38 = tpu.matmul %10, %6, %cst_17 {dimension_numbers = #tpu.dot_dimension_numbers<[1], [1], [0], [0], [0, 0, 1, 0], [], []>} : vector<16x32xf32>, vector<4x32xf32>, vector<16x4xf32> -> vector<16x4xf32>
    %39 = vector.broadcast %8 : vector<1x4xf32> to vector<16x4xf32>
    %40 = arith.addf %38, %39 : vector<16x4xf32>
    %41 = arith.mulf %25, %40 : vector<16x4xf32>
    %cst_18 = arith.constant dense<0.000000e+00> : vector<16xf32>
    %42 = vector.multi_reduction <add>, %41, %cst_18 [1] : vector<16x4xf32> to vector<16xf32>
    %43 = vector.shape_cast %42 : vector<16xf32> to vector<16x1xf32>
    %44 = vector.broadcast %43 : vector<16x1xf32> to vector<16x4xf32>
    %45 = arith.subf %40, %44 : vector<16x4xf32>
    %46 = arith.mulf %25, %45 : vector<16x4xf32>
    %cst_19 = arith.constant 1.250000e-01 : f32
    %47 = vector.broadcast %cst_19 : f32 to vector<16x4xf32>
    %48 = arith.mulf %46, %47 : vector<16x4xf32>
    %cst_20 = arith.constant dense<0.000000e+00> : vector<4x32xf32>
    %49 = tpu.matmul %48, %10, %cst_20 {dimension_numbers = #tpu.dot_dimension_numbers<[0], [0], [1], [1], [0, 1, 1, 1], [], []>} : vector<16x4xf32>, vector<16x32xf32>, vector<4x32xf32> -> vector<4x32xf32>
    %cst_21 = arith.constant 4.000000e-04 : f32
    %50 = vector.broadcast %cst_21 : f32 to vector<4x32xf32>
    %51 = arith.mulf %50, %6 : vector<4x32xf32>
    %52 = arith.addf %49, %51 : vector<4x32xf32>
    %cst_22 = arith.constant dense<0.000000e+00> : vector<4xf32>
    %53 = vector.multi_reduction <add>, %48, %cst_22 [0] : vector<16x4xf32> to vector<4xf32>
    %54 = vector.shape_cast %53 : vector<4xf32> to vector<1x4xf32>
    %cst_23 = arith.constant 4.000000e-04 : f32
    %55 = vector.broadcast %cst_23 : f32 to vector<1x4xf32>
    %56 = arith.mulf %55, %8 : vector<1x4xf32>
    %57 = arith.addf %54, %56 : vector<1x4xf32>
    %cst_24 = arith.constant 1.000000e-01 : f32
    %58 = vector.broadcast %cst_24 : f32 to vector<4x32xf32>
    %59 = arith.mulf %58, %32 : vector<4x32xf32>
    %60 = arith.subf %5, %59 : vector<4x32xf32>
    %cst_25 = arith.constant 1.000000e-01 : f32
    %61 = vector.broadcast %cst_25 : f32 to vector<1x4xf32>
    %62 = arith.mulf %61, %37 : vector<1x4xf32>
    %63 = arith.subf %7, %62 : vector<1x4xf32>
    %c0_26 = arith.constant 0 : index
    %c0_27 = arith.constant 0 : index
    %c0_28 = arith.constant 0 : index
    %64 = vector.load %arg3[%c0_26, %c0_27, %c0_28] : memref<1x8x32xf32, #tpu.memory_space<vmem>>, vector<1x8x32xf32>
    %65 = vector.shape_cast %64 : vector<1x8x32xf32> to vector<8x32xf32>
    %c0_29 = arith.constant 0 : index
    %c0_30 = arith.constant 0 : index
    %c0_31 = arith.constant 0 : index
    %66 = vector.load %arg4[%c0_29, %c0_30, %c0_31] : memref<1x8x4xf32, #tpu.memory_space<vmem>>, vector<1x8x4xf32>
    %67 = vector.shape_cast %66 : vector<1x8x4xf32> to vector<8x4xf32>
    %cst_32 = arith.constant dense<0.000000e+00> : vector<8x4xf32>
    %68 = tpu.matmul %65, %60, %cst_32 {dimension_numbers = #tpu.dot_dimension_numbers<[1], [1], [0], [0], [0, 0, 1, 0], [], []>} : vector<8x32xf32>, vector<4x32xf32>, vector<8x4xf32> -> vector<8x4xf32>
    %69 = vector.broadcast %63 : vector<1x4xf32> to vector<8x4xf32>
    %70 = arith.addf %68, %69 : vector<8x4xf32>
    %cst_33 = arith.constant dense<0xFF800000> : vector<8xf32>
    %71 = vector.multi_reduction <maximumf>, %70, %cst_33 [1] : vector<8x4xf32> to vector<8xf32>
    %72 = vector.shape_cast %71 : vector<8xf32> to vector<8x1xf32>
    %73 = vector.broadcast %72 : vector<8x1xf32> to vector<8x4xf32>
    %74 = arith.subf %70, %73 : vector<8x4xf32>
    %75 = math.exp %74 : vector<8x4xf32>
    %cst_34 = arith.constant dense<0.000000e+00> : vector<8xf32>
    %76 = vector.multi_reduction <add>, %75, %cst_34 [1] : vector<8x4xf32> to vector<8xf32>
    %77 = vector.shape_cast %76 : vector<8xf32> to vector<8x1xf32>
    %78 = tpu.reciprocal %77 {approx = true} : vector<8x1xf32> -> vector<8x1xf32>
    %79 = vector.broadcast %78 : vector<8x1xf32> to vector<8x4xf32>
    %80 = arith.mulf %75, %79 : vector<8x4xf32>
    %81 = vector.broadcast %72 : vector<8x1xf32> to vector<8x4xf32>
    %82 = arith.subf %70, %81 : vector<8x4xf32>
    %83 = math.log %77 : vector<8x1xf32>
    %84 = vector.broadcast %83 : vector<8x1xf32> to vector<8x4xf32>
    %85 = arith.subf %82, %84 : vector<8x4xf32>
    %86 = arith.mulf %67, %85 : vector<8x4xf32>
    %cst_35 = arith.constant dense<0.000000e+00> : vector<8xf32>
    %87 = vector.multi_reduction <add>, %86, %cst_35 [1] : vector<8x4xf32> to vector<8xf32>
    %88 = vector.shape_cast %87 : vector<8xf32> to vector<8x1xf32>
    %cst_36 = arith.constant 0.000000e+00 : f32
    %89 = vector.broadcast %cst_36 : f32 to vector<8x1xf32>
    %90 = arith.subf %89, %88 : vector<8x1xf32>
    %cst_37 = arith.constant dense<0.000000e+00> : vector<1xf32>
    %91 = vector.multi_reduction <add>, %90, %cst_37 [0] : vector<8x1xf32> to vector<1xf32>
    %92 = vector.shape_cast %91 : vector<1xf32> to vector<1x1xf32>
    %cst_38 = arith.constant 1.250000e-01 : f32
    %93 = vector.broadcast %cst_38 : f32 to vector<1x1xf32>
    %94 = arith.mulf %92, %93 : vector<1x1xf32>
    %95 = vector.shape_cast %94 : vector<1x1xf32> to vector<1x1xf32>
    %96 = vector.broadcast %95 : vector<1x1xf32> to vector<1x4xf32>
    %97 = tpu.concatenate %80, %96 in 0 : vector<8x4xf32>, vector<1x4xf32> -> vector<9x4xf32>
    %c0_39 = arith.constant 0 : index
    %c0_40 = arith.constant 0 : index
    %c0_41 = arith.constant 0 : index
    %98 = vector.load %arg9[%c0_39, %c0_40, %c0_41] : memref<1x9x4xf32, #tpu.memory_space<vmem>>, vector<1x9x4xf32>
    %99 = vector.shape_cast %98 : vector<1x9x4xf32> to vector<9x4xf32>
    %100 = vector.shape_cast %97 : vector<9x4xf32> to vector<1x9x4xf32>
    tpu.vector_store %arg9[%c0_39, %c0_40, %c0_41], %100 {strides = array<i32>} : memref<1x9x4xf32, #tpu.memory_space<vmem>>, vector<1x9x4xf32>,
    %101 = arith.subf %80, %67 : vector<8x4xf32>
    %cst_42 = arith.constant 1.250000e-01 : f32
    %102 = vector.broadcast %cst_42 : f32 to vector<8x4xf32>
    %103 = arith.mulf %101, %102 : vector<8x4xf32>
    %cst_43 = arith.constant dense<0.000000e+00> : vector<4x32xf32>
    %104 = tpu.matmul %103, %65, %cst_43 {dimension_numbers = #tpu.dot_dimension_numbers<[0], [0], [1], [1], [0, 1, 1, 1], [], []>} : vector<8x4xf32>, vector<8x32xf32>, vector<4x32xf32> -> vector<4x32xf32>
    %cst_44 = arith.constant dense<0.000000e+00> : vector<4xf32>
    %105 = vector.multi_reduction <add>, %103, %cst_44 [0] : vector<8x4xf32> to vector<4xf32>
    %106 = vector.shape_cast %105 : vector<4xf32> to vector<1x4xf32>
    %107 = arith.subf %52, %104 : vector<4x32xf32>
    %cst_45 = arith.constant 0.00999999977 : f32
    %108 = vector.broadcast %cst_45 : f32 to vector<4x32xf32>
    %109 = arith.mulf %108, %107 : vector<4x32xf32>
    %110 = arith.subf %6, %109 : vector<4x32xf32>
    %111 = arith.subf %57, %106 : vector<1x4xf32>
    %cst_46 = arith.constant 0.00999999977 : f32
    %112 = vector.broadcast %cst_46 : f32 to vector<1x4xf32>
    %113 = arith.mulf %112, %111 : vector<1x4xf32>
    %114 = arith.subf %8, %113 : vector<1x4xf32>
    %115 = tpu.concatenate %60, %110 in 0 : vector<4x32xf32>, vector<4x32xf32> -> vector<8x32xf32>
    %c0_47 = arith.constant 0 : index
    %c0_48 = arith.constant 0 : index
    %116 = vector.load %arg7[%c0_47, %c0_48] : memref<8x32xf32, #tpu.memory_space<vmem>>, vector<8x32xf32>
    tpu.vector_store %arg7[%c0_47, %c0_48], %115 {strides = array<i32>} : memref<8x32xf32, #tpu.memory_space<vmem>>, vector<8x32xf32>,
    %117 = tpu.concatenate %63, %114 in 0 : vector<1x4xf32>, vector<1x4xf32> -> vector<2x4xf32>
    %c0_49 = arith.constant 0 : index
    %c0_50 = arith.constant 0 : index
    %118 = vector.load %arg8[%c0_49, %c0_50] : memref<2x4xf32, #tpu.memory_space<vmem>>, vector<2x4xf32>
    tpu.vector_store %arg8[%c0_49, %c0_50], %117 {strides = array<i32>} : memref<2x4xf32, #tpu.memory_space<vmem>>, vector<2x4xf32>,
    %cst_51 = arith.constant dense<0.000000e+00> : vector<8x32xf32>
    %119 = tpu.matmul %103, %60, %cst_51 {dimension_numbers = #tpu.dot_dimension_numbers<[1], [0], [0], [1], [0, 0, 1, 1], [], []>} : vector<8x4xf32>, vector<4x32xf32>, vector<8x32xf32> -> vector<8x32xf32>
    %120 = arith.mulf %65, %65 : vector<8x32xf32>
    %cst_52 = arith.constant 1.000000e+00 : f32
    %121 = vector.broadcast %cst_52 : f32 to vector<8x32xf32>
    %122 = arith.subf %121, %120 : vector<8x32xf32>
    %123 = arith.mulf %119, %122 : vector<8x32xf32>
    %124 = vector.extract_strided_slice %10 {offsets = [8, 0], sizes = [8, 32], strides = [1, 1]} : vector<16x32xf32> to vector<8x32xf32>
    %125 = vector.extract_strided_slice %12 {offsets = [8, 0], sizes = [8, 4], strides = [1, 1]} : vector<16x4xf32> to vector<8x4xf32>
    %cst_53 = arith.constant dense<0.000000e+00> : vector<8x4xf32>
    %126 = tpu.matmul %124, %60, %cst_53 {dimension_numbers = #tpu.dot_dimension_numbers<[1], [1], [0], [0], [0, 0, 1, 0], [], []>} : vector<8x32xf32>, vector<4x32xf32>, vector<8x4xf32> -> vector<8x4xf32>
    %127 = vector.broadcast %63 : vector<1x4xf32> to vector<8x4xf32>
    %128 = arith.addf %126, %127 : vector<8x4xf32>
    %cst_54 = arith.constant dense<0xFF800000> : vector<8xf32>
    %129 = vector.multi_reduction <maximumf>, %128, %cst_54 [1] : vector<8x4xf32> to vector<8xf32>
    %130 = vector.shape_cast %129 : vector<8xf32> to vector<8x1xf32>
    %131 = vector.broadcast %130 : vector<8x1xf32> to vector<8x4xf32>
    %132 = arith.subf %128, %131 : vector<8x4xf32>
    %133 = math.exp %132 : vector<8x4xf32>
    %cst_55 = arith.constant dense<0.000000e+00> : vector<8xf32>
    %134 = vector.multi_reduction <add>, %133, %cst_55 [1] : vector<8x4xf32> to vector<8xf32>
    %135 = vector.shape_cast %134 : vector<8xf32> to vector<8x1xf32>
    %136 = tpu.reciprocal %135 {approx = true} : vector<8x1xf32> -> vector<8x1xf32>
    %137 = vector.broadcast %136 : vector<8x1xf32> to vector<8x4xf32>
    %138 = arith.mulf %133, %137 : vector<8x4xf32>
    %139 = arith.subf %138, %125 : vector<8x4xf32>
    %cst_56 = arith.constant 1.250000e-01 : f32
    %140 = vector.broadcast %cst_56 : f32 to vector<8x4xf32>
    %141 = arith.mulf %139, %140 : vector<8x4xf32>
    %cst_57 = arith.constant dense<0.000000e+00> : vector<8x4xf32>
    %142 = tpu.matmul %124, %110, %cst_57 {dimension_numbers = #tpu.dot_dimension_numbers<[1], [1], [0], [0], [0, 0, 1, 0], [], []>} : vector<8x32xf32>, vector<4x32xf32>, vector<8x4xf32> -> vector<8x4xf32>
    %143 = vector.broadcast %114 : vector<1x4xf32> to vector<8x4xf32>
    %144 = arith.addf %142, %143 : vector<8x4xf32>
    %145 = arith.mulf %138, %144 : vector<8x4xf32>
    %cst_58 = arith.constant dense<0.000000e+00> : vector<8xf32>
    %146 = vector.multi_reduction <add>, %145, %cst_58 [1] : vector<8x4xf32> to vector<8xf32>
    %147 = vector.shape_cast %146 : vector<8xf32> to vector<8x1xf32>
    %148 = vector.broadcast %147 : vector<8x1xf32> to vector<8x4xf32>
    %149 = arith.subf %144, %148 : vector<8x4xf32>
    %150 = arith.mulf %138, %149 : vector<8x4xf32>
    %cst_59 = arith.constant 1.250000e-01 : f32
    %151 = vector.broadcast %cst_59 : f32 to vector<8x4xf32>
    %152 = arith.mulf %150, %151 : vector<8x4xf32>
    %cst_60 = arith.constant dense<0.000000e+00> : vector<8x32xf32>
    %153 = tpu.matmul %152, %60, %cst_60 {dimension_numbers = #tpu.dot_dimension_numbers<[1], [0], [0], [1], [0, 0, 1, 1], [], []>} : vector<8x4xf32>, vector<4x32xf32>, vector<8x32xf32> -> vector<8x32xf32>
    %cst_61 = arith.constant dense<0.000000e+00> : vector<8x32xf32>
    %154 = tpu.matmul %141, %110, %cst_61 {dimension_numbers = #tpu.dot_dimension_numbers<[1], [0], [0], [1], [0, 0, 1, 1], [], []>} : vector<8x4xf32>, vector<4x32xf32>, vector<8x32xf32> -> vector<8x32xf32>
    %155 = arith.addf %153, %154 : vector<8x32xf32>
    %156 = arith.mulf %124, %124 : vector<8x32xf32>
    %cst_62 = arith.constant 1.000000e+00 : f32
    %157 = vector.broadcast %cst_62 : f32 to vector<8x32xf32>
    %158 = arith.subf %157, %156 : vector<8x32xf32>
    %159 = arith.mulf %155, %158 : vector<8x32xf32>
    %160 = tpu.concatenate %123, %159 in 0 : vector<8x32xf32>, vector<8x32xf32> -> vector<16x32xf32>
    %c0_63 = arith.constant 0 : index
    %c0_64 = arith.constant 0 : index
    %c0_65 = arith.constant 0 : index
    %161 = vector.load %arg10[%c0_63, %c0_64, %c0_65] : memref<1x16x32xf32, #tpu.memory_space<vmem>>, vector<1x16x32xf32>
    %162 = vector.shape_cast %161 : vector<1x16x32xf32> to vector<16x32xf32>
    %163 = vector.shape_cast %160 : vector<16x32xf32> to vector<1x16x32xf32>
    tpu.vector_store %arg10[%c0_63, %c0_64, %c0_65], %163 {strides = array<i32>} : memref<1x16x32xf32, #tpu.memory_space<vmem>>, vector<1x16x32xf32>,
    return
  }
  func.func @transform_0(%arg0: i32) -> (i32, i32, i32) {
    %c0_i32 = arith.constant 0 : i32
    %c0_i32_0 = arith.constant 0 : i32
    %c0_i32_1 = arith.constant 0 : i32
    return %arg0, %c0_i32, %c0_i32_0 : i32, i32, i32
  }
  func.func @transform_1(%arg0: i32) -> (i32, i32, i32) {
    %c0_i32 = arith.constant 0 : i32
    %c0_i32_0 = arith.constant 0 : i32
    %c0_i32_1 = arith.constant 0 : i32
    return %arg0, %c0_i32, %c0_i32_0 : i32, i32, i32
  }
  func.func @transform_2(%arg0: i32) -> (i32, i32, i32) {
    %c0_i32 = arith.constant 0 : i32
    %c0_i32_0 = arith.constant 0 : i32
    %c0_i32_1 = arith.constant 0 : i32
    return %arg0, %c0_i32, %c0_i32_0 : i32, i32, i32
  }
  func.func @transform_3(%arg0: i32) -> (i32, i32, i32) {
    %c0_i32 = arith.constant 0 : i32
    %c0_i32_0 = arith.constant 0 : i32
    %c0_i32_1 = arith.constant 0 : i32
    return %arg0, %c0_i32, %c0_i32_0 : i32, i32, i32
  }
  func.func @transform_4(%arg0: i32) -> (i32, i32) {
    %c0_i32 = arith.constant 0 : i32
    %c0_i32_0 = arith.constant 0 : i32
    %c0_i32_1 = arith.constant 0 : i32
    return %c0_i32, %c0_i32_0 : i32, i32
  }
  func.func @transform_5(%arg0: i32) -> (i32, i32) {
    %c0_i32 = arith.constant 0 : i32
    %c0_i32_0 = arith.constant 0 : i32
    %c0_i32_1 = arith.constant 0 : i32
    return %c0_i32, %c0_i32_0 : i32, i32
  }
  func.func @transform_6(%arg0: i32) -> (i32, i32) {
    %c0_i32 = arith.constant 0 : i32
    %c0_i32_0 = arith.constant 0 : i32
    %c0_i32_1 = arith.constant 0 : i32
    return %c0_i32, %c0_i32_0 : i32, i32
  }
  func.func @transform_7(%arg0: i32) -> (i32, i32) {
    %c0_i32 = arith.constant 0 : i32
    %c0_i32_0 = arith.constant 0 : i32
    %c0_i32_1 = arith.constant 0 : i32
    return %c0_i32, %c0_i32_0 : i32, i32
  }
  func.func @transform_8(%arg0: i32) -> (i32, i32, i32) {
    %c0_i32 = arith.constant 0 : i32
    %c0_i32_0 = arith.constant 0 : i32
    %c0_i32_1 = arith.constant 0 : i32
    return %arg0, %c0_i32, %c0_i32_0 : i32, i32, i32
  }
  func.func @transform_9(%arg0: i32) -> (i32, i32, i32) {
    %c0_i32 = arith.constant 0 : i32
    %c0_i32_0 = arith.constant 0 : i32
    %c0_i32_1 = arith.constant 0 : i32
    return %arg0, %c0_i32, %c0_i32_0 : i32, i32, i32
  }
}

</mosaic_0001>

<bundles_post_ra>
// kernel: _forward_impl.1
= control target key start
LH: loop header
LB: loop body
LE: loop exit
PB: predicated region body
PF: predicated region fallthrough
CT: control target
= control target key end

     0   :  { %s1855_s30 = smov 0   ;;  %s2088_s0 = inlined_call_operand.vmem [shape: f32[2,16,32], index: 0, kind: input, shape index: {}]   ;;  %s2089_s1 = inlined_call_operand.vmem [shape: f32[2,16,4], index: 1, kind: input, shape index: {}]   ;;  %s2090_s2 = inlined_call_operand.vmem [shape: f32[2,8,32], index: 2, kind: input, shape index: {}]   ;;  %s2091_s3 = inlined_call_operand.vmem [shape: f32[2,8,4], index: 3, kind: input, shape index: {}]   ;;  %s2092_s4 = inlined_call_operand.vmem [shape: f32[8,32], index: 4, kind: input, shape index: {}, may-alias: {4,6}]   ;;  %s2093_s5 = inlined_call_operand.vmem [shape: f32[2,4], index: 5, kind: input, shape index: {}, may-alias: {5,7}]   ;;  %s2094_s6 = inlined_call_operand.vmem [shape: f32[8,32], index: 6, kind: output, shape index: {0}, may-alias: {4,6}]   ;;  %s2095_s7 = inlined_call_operand.vmem [shape: f32[2,4], index: 7, kind: output, shape index: {1}, may-alias: {5,7}]   ;;  %s2096_s8 = inlined_call_operand.vmem [shape: f32[2,9,4], index: 8, kind: output, shape index: {2}]   ;;  %s2097_s9 = inlined_call_operand.vmem [shape: f32[2,16,32], index: 9, kind: output, shape index: {3}]  }
   0x1 LB: > { %s1639_s10 = sadd.s32 4294967295, %s1801_s30   ;;  %p1643_p0 = scmp.ge.s32.totalorder %s1801_s30, 1  ;;  %s1801_s30 = sphi %s1855_s30, %s20_s30  }
   0x2   : > { %p312_p1 = scmp.lt.s32.totalorder %s1801_s30, 3 }
   0x4   : > { %p313_p2 = pnand %p1643_p0, %p312_p1 }
   0x5   : > { %p366_p3 = scmp.lt.s32.totalorder (!%p313_p2), %s1639_s10, 1  ;;  %p1654_p4 = scmp.ne.s32.totalorder (!%p313_p2), %s1639_s10, 0 }
   0x6   : > { %316 = sbr.rel (%p313_p2) target bundleno = 2362 (0x93a), region = 44 }
   0xb   : > { %s367_s11 = scalar_select %p366_p3, %s1639_s10, 1 }
   0xc   : > { %397 = sbr.rel (%p1654_p4) target bundleno = 20 (0x14), region = 48 }
   0xd   : > { %s1678_s12 = sshll.u32 %s367_s11, 4  ;;  %s1648_s13 = sshll.u32 %s367_s11, 3 }
   0xe   : > { %s370_s16 = scalar_lea.vmem %s2088_s0, %s1678_s12  ;;  %s1869_s19 = scalar_lea.vmem %s2089_s1, %s1678_s12 }
   0xf   : > { %s1874_s22 = scalar_lea.vmem %s2090_s2, %s1648_s13  ;;  %s1879_s25 = scalar_lea.vmem %s2091_s3, %s1648_s13 }
  0x10   : > { %s1884_s28 = scalar_lea.vmem %s2096_s8, %s1678_s12  ;;  %s1889_s14 = scalar_lea.vmem %s2097_s9, %s1678_s12 }
  0x11   : > { %v398_v0 = vld [vmem:[%s2092_s4] sm:$0xff]  ;;  %vm399_vm0 = vcmask 261120   ;;  %vm402_vm1 = vcmask 25600  }
  0x12   : > { %v401_v1 = vld [vmem:[%s2093_s5] sm:$0x3]  ;;  %400 = vst.msk [vmem:[%s2094_s6] sm:$0xff] %vm399_vm0, %v398_v0 }
  0x13   : > { %403 = vst.msk [vmem:[%s2095_s7] sm:$0x3] %vm402_vm1, %v401_v1 }
  0x14 PF: > { %vm414_vm2 = vcmask 261120   ;;  %v1908_v3 = vld [vmem:[%s370_s16] sm:$0xff]  ;;  %v1916_v4 = vld [vmem:[%s370_s16 + $0x8] sm:$0xff]  ;;  %v410_v6 = vlaneseq  ;;  %vm499_vm3 = vcmask 31744   ;;  %v1803_v27 = vmov 0.0  }
  0x15   : > { %1710 = vmatprep.mubr.msk.f32.mxu0 %vm414_vm2, %v1908_v3  ;;  %1713 = vmatprep.subr.mxu1 %v1803_v27  ;;  %vm1804_vm4 = vmmov 0   ;;  %v408_v31 = vld [vmem:[%s1869_s19] sm:$0xff]  ;;  %v1957_v35 = vld [vmem:[%s1869_s19 + $0x8] sm:$0xff]  ;;  %vm559_vm5 = vcmask 130048   ;;  %vm1097_vm6 = vcmask 1043456   ;;  %vm1100_vm7 = vcmask 1040384  }
  0x16   : > { %v1927_v7 = vshrl.u32 %v410_v6, 7  ;;  %1717 = vmatprep.mubr.msk.f32.mxu1 %vm1804_vm4, %v1803_v27  ;;  %1714 = vmatpush3.msra.mxu1 %v1916_v4  ;;  %v1982_v50 = vld [vmem:[%s1874_s22] sm:$0xff]  ;;  %vm1102_vm8 = vcmask 25600   ;;  %vm1007_vm9 = vcmask 64512   ;;  %vm971_vm10 = vcmask 24576  }
  0x17   : > { %1715 = vmatprep.subr.mxu1 %v1803_v27 }
  0x18   : > { %v412_v8 = vsub.s32 0, %v1927_v7  ;;  %1716 = vmatpush3.msra.mxu1 %v1908_v3 }
  0x19   : > { %v1906_v2 = vld [vmem:[%s2094_s6] sm:$0xff]  ;;  %1725 = vmatprep.subr.mxu1 %v1803_v27 }
  0x1a   : > { %1708 = vmatprep.subr.msk.mxu0 %vm414_vm2, %v1906_v2  ;;  %v648_v5 = vrot.slane %v1906_v2, 4  ;;  %v1933_v9 = vld [vmem:[%s2095_s7] sm:$0x3]  ;;  %v1973_v44 = vmul.f32 0.0004, %v1906_v2 }
  0x1b   : > { %1709 = vmatpush3.xpose.msk.msra.mxu0 %vm414_vm2, %v1906_v2  ;;  %v413_v11 = vrot.slane %v1933_v9, %v412_v8  ;;  %v1993_v57 = vmul.f32 0.0004, %v1933_v9 }
  0x1c   : > { %1720 = vmatprep.subr.msk.mxu0 %vm414_vm2, %v648_v5 }
  0x1e   : > { %1711 = vmatmul.mubr.msk.f32.vlgmr.msra.gmra.mxu0 %vm414_vm2, %v1916_v4 }
  0x1f   : > { %1722 = vmatprep.mubr.msk.f32.mxu0 %vm414_vm2, %v1908_v3  ;;  %1721 = vmatpush3.xpose.msk.msra.mxu0 %vm414_vm2, %v648_v5 }
  0x20   : > { %1732 = vmatprep.subr.mxu0 %v1803_v27 }
  0x22   : > { %1723 = vmatmul.mubr.msk.f32.vlgmr.msra.gmra.mxu0 %vm414_vm2, %v1916_v4 }
  0x23   : > { %1734 = vmatprep.mubr.msk.f32.mxu0 %vm1804_vm4, %v1803_v27 }
  0xde   : > { %v1712_v10 = vpop.f32.mrf.mxu0 }
  0xdf   : > { %v496_v14 = vadd.f32 %v1712_v10, %v413_v11 }
  0xe0   : > { %v490_v12 = vpop.f32.mrf.mxu0 }
  0xe1   : > { %v491_v13 = vadd.f32 %v490_v12, %v413_v11  ;;  %v503_v16 = vsel %vm499_vm3, %v496_v14, -inf  ;;  %v646_v12 = vsub.s32 1, %v1927_v7 }
  0xe2   : > { %v1724_v60 = vpop.f32.mrf.mxu0 }
  0xe3   : > { %v500_v15 = vsel %vm499_vm3, %v491_v13, -inf }
  0xe4   : > { %501 = vmax.xlane.f32.xlu0 %v500_v15  ;;  %v717_v62 = vpop.f32.mrf.mxu0 }
  0xe8   : > { %504 = vmax.xlane.f32.xlu0 %v503_v16 }
 0x16d   : > { %v502_v17 = vpop.xlane.xlu0 %501 }
 0x16e   : > { %v506_v18 = vsub.f32 %v491_v13, %v502_v17  ;;  %v647_v13 = vrot.slane %v1933_v9, %v646_v12 }
 0x170   : > { %v508_v19 = vmul.f32 1.442695, %v506_v18  ;;  %v723_v15 = vadd.f32 %v1724_v60, %v647_v13 }
 0x171   : > { %v505_v20 = vpop.xlane.xlu0 %504 }
 0x172   : > { %1777 = vpow2.f32 %v508_v19  ;;  %v507_v21 = vsub.f32 %v496_v14, %v505_v20  ;;  %v718_v14 = vadd.f32 %v717_v62, %v647_v13 }
 0x174   : > { %v510_v22 = vmul.f32 1.442695, %v507_v21 }
 0x176   : > { %1779 = vpow2.f32 %v510_v22 }
 0x17f   : > { %v1778_v23 = vpop.eup %1777 }
 0x180   : > { %v512_v24 = vsel %vm499_vm3, %v1778_v23, 0.0 }
 0x181   : > { %513 = vadd.xlane.f32.xlu1 %v512_v24 }
 0x183   : > { %v1780_v25 = vpop.eup %1779 }
 0x184   : > { %v515_v26 = vsel %vm499_vm3, %v1780_v25, 0.0 }
 0x185   : > { %516 = vadd.xlane.f32.xlu1 %v515_v26 }
 0x20a   : > { %v514_v28 = vpop.xlane.xlu1 %513 }
 0x20b   : > { %1781 = vrcp.f32 %v514_v28 }
 0x20e   : > { %v517_v29 = vpop.xlane.xlu1 %516 }
 0x20f   : > { %1783 = vrcp.f32 %v517_v29 }
 0x218   : > { %v1782_v30 = vpop.eup %1781 }
 0x219   : > { %v1953_v32 = vmul.f32 %v1782_v30, %v1778_v23 }
 0x21b   : > { %v522_v33 = vsub.f32 %v1953_v32, %v408_v31  ;;  %v726_v17 = vmul.f32 %v718_v14, %v1953_v32 }
 0x21c   : > { %v1784_v34 = vpop.eup %1783 }
 0x21d   : > { %v524_v36 = vmul.f32 0.125, %v522_v33  ;;  %v1959_v37 = vmul.f32 %v1784_v34, %v1780_v25  ;;  %v728_v18 = vsel %vm499_vm3, %v726_v17, 0.0  ;;  %v863_v33 = vld [vmem:[%s1879_s25] sm:$0xff] }
 0x21f   : > { %527 = vxpose.xlu0.b32.start [1/2] (short) (narrow) %v524_v36, 8  ;;  %v523_v38 = vsub.f32 %v1959_v37, %v1957_v35  ;;  %v633_v40 = vsel %vm499_vm3, %v524_v36, 0.0  ;;  %v727_v19 = vmul.f32 %v723_v15, %v1959_v37 }
 0x221   : > { %v525_v39 = vmul.f32 0.125, %v523_v38  ;;  %v731_v20 = vsel %vm499_vm3, %v727_v19, 0.0 }
 0x223   : > { %528 = vxpose.xlu0.b32.end [2/2] (short) (narrow) %v525_v39, 8  ;;  %v634_v41 = vsel %vm499_vm3, %v525_v39, 0.0 }
 0x224   : > { %v635_v42 = vadd.f32 %v634_v41, %v633_v40 }
 0x226   : > { %v636_v51 = vrot.slane %v635_v42, 4 }
 0x228   : > { %v637_v52 = vadd.f32 %v636_v51, %v635_v42 }
 0x22a   : > { %v638_v53 = vrot.slane %v637_v52, 2 }
 0x22c   : > { %v639_v54 = vadd.f32 %v638_v53, %v637_v52 }
 0x22e   : > { %v640_v55 = vrot.slane %v639_v54, 1 }
 0x230   : > { %v641_v56 = vadd.f32 %v640_v55, %v639_v54 }
 0x232   : > { %v643_v58 = vadd.f32 %v1993_v57, %v641_v56 }
 0x234   : > { %v860_v59 = vmul.f32 0.1, %v643_v58 }
 0x236   : > { %v1997_v61 = vsub.f32 %v1933_v9, %v860_v59 }
 0x238   : > { %v2002_v63 = vrot.slane %v1997_v61, %v412_v8 }
 0x29b   : > { %v543_v43 = vpop.trf.xlu0 }
 0x29c   : > { %1718 = vmatmul.mubr.msk.f32.vlgmr.msra.gmra.mxu1 %vm559_vm5, %v543_v43 }
 0x29d   : > { %1726 = vmatpush3.msra.mxu1 %v1916_v4  ;;  %1729 = vmatprep.mubr.msk.f32.mxu1 %vm1804_vm4, %v1803_v27 }
 0x29e   : > { %1727 = vmatprep.subr.mxu1 %v1803_v27 }
 0x29f   : > { %1728 = vmatpush3.msra.mxu1 %v1908_v3 }
 0x2a0   : > { %1737 = vmatprep.subr.mxu1 %v1803_v27 }
 0x35c   : > { %v629_v45 = vpop.f32.mrf.mxu1 }
 0x35d   : > { %v630_v46 = vadd.f32 %v629_v45, %v1973_v44 }
 0x35e   : > { %v1719_v47 = vpop.f32.mrf.mxu1 }
 0x35f   : > { %v858_v48 = vmul.f32 0.1, %v630_v46 }
 0x361   : > { %v1977_v49 = vsub.f32 %v1906_v2, %v858_v48 }
 0x363   : > { %1733 = vmatpush3.xpose.msk.msra.mxu0 %vm414_vm2, %v1977_v49 }
 0x364   : > { %1742 = vmatprep.subr.mxu0 %v1803_v27 }
 0x366   : > { %1735 = vmatmul.mubr.msk.f32.vlgmr.msra.gmra.mxu0 %vm414_vm2, %v1982_v50 }
 0x367   : > { %1743 = vmatpush3.msk.msra.mxu0 %vm1097_vm6, %v1977_v49  ;;  %1744 = vmatprep.mubr.msk.f32.mxu0 %vm1804_vm4, %v1803_v27 }
 0x368   : > { %1752 = vmatprep.subr.mxu0 %v1803_v27 }
 0x426   : > { %v940_v0 = vpop.f32.mrf.mxu0 }
 0x427   : > { %v941_v1 = vadd.f32 %v940_v0, %v2002_v63 }
 0x428   : > { %v1736_v3 = vpop.f32.mrf.mxu0 }
 0x429   : > { %v944_v5 = vsel %vm499_vm3, %v941_v1, -inf }
 0x42a   : > { %945 = vmax.xlane.f32.xlu1 %v944_v5 }
 0x4b3   : > { %v946_v6 = vpop.xlane.xlu1 %945 }
 0x4b4   : > { %v947_v10 = vsub.f32 %v941_v1, %v946_v6 }
 0x4b6   : > { %v948_v11 = vmul.f32 1.442695, %v947_v10 }
 0x4b8   : > { %1785 = vpow2.f32 %v948_v11 }
 0x4c5   : > { %v1786_v8 = vpop.eup %1785 }
 0x4c6   : > { %v950_v16 = vsel %vm499_vm3, %v1786_v8, 0.0 }
 0x4c7   : > { %951 = vadd.xlane.f32.xlu1 %v950_v16 }
 0x4cb   : > { %729 = vadd.xlane.f32.xlu1 %v728_v18 }
 0x4cf   : > { %732 = vadd.xlane.f32.xlu1 %v731_v20 }
 0x550   : > { %v952_v21 = vpop.xlane.xlu1 %951 }
 0x551   : > { %1787 = vrcp.f32 %v952_v21 }
 0x552   : > { %1789 = vlog2.f32 %v952_v21 }
 0x554   : > { %v730_v22 = vpop.xlane.xlu1 %729 }
 0x555   : > { %v734_v23 = vsub.f32 %v718_v14, %v730_v22 }
 0x557   : > { %v736_v24 = vmul.f32 %v734_v23, %v1953_v32 }
 0x558   : > { %v733_v25 = vpop.xlane.xlu1 %732 }
 0x559   : > { %v735_v26 = vsub.f32 %v723_v15, %v733_v25  ;;  %v738_v28 = vmul.f32 0.125, %v736_v24  ;;  %v773_v15 = vrot.slane %v1973_v44, 4 }
 0x55b   : > { %v737_v29 = vmul.f32 %v735_v26, %v1959_v37  ;;  %740 = vxpose.xlu1.b32.start [1/2] (short) (narrow) %v738_v28, 8  ;;  %v848_v38 = vsel %vm499_vm3, %v738_v28, 0.0 }
 0x55d   : > { %v739_v30 = vmul.f32 0.125, %v737_v29 }
 0x55e   : > { %v1788_v31 = vpop.eup %1787 }
 0x55f   : > { %v1790_v34 = vpop.eup %1789  ;;  %v849_v36 = vsel %vm499_vm3, %v739_v30, 0.0  ;;  %741 = vxpose.xlu1.b32.end [2/2] (short) (narrow) %v739_v30, 8  ;;  %v954_v39 = vmul.f32 %v1788_v31, %v1786_v8 }
 0x560   : > { %v956_v40 = vmul.f32 0.6931472, %v1790_v34  ;;  %v850_v41 = vadd.f32 %v849_v36, %v848_v38 }
 0x561   : > { %v973_v32 = vsub.f32 %v954_v39, %v863_v33  ;;  %970 = vst.msk [vmem:[%s1884_s28] sm:$0xff] %vm499_vm3, %v954_v39 }
 0x562   : > { %v851_v42 = vrot.slane %v850_v41, 4  ;;  %v957_v43 = vsub.f32 %v947_v10, %v956_v40 }
 0x563   : > { %v974_v45 = vmul.f32 0.125, %v973_v32 }
 0x564   : > { %v852_v37 = vadd.f32 %v851_v42, %v850_v41  ;;  %v2022_v46 = vmul.f32 %v957_v43, %v863_v33 }
 0x565   : > { %975 = vxpose.xlu0.b32.start.end [1/1] (short) (narrow) %v974_v45, 8  ;;  %v1081_v47 = vsel %vm499_vm3, %v974_v45, 0.0  ;;  %1745 = vmatmul.mubr.msk.f32.vlgmr.msra.gmra.mxu0 %vm499_vm3, %v974_v45 }
 0x566   : > { %v853_v48 = vrot.slane %v852_v37, 2  ;;  %v1082_v51 = vrot.slane %v1081_v47, 4  ;;  %1754 = vmatprep.mubr.msk.f32.mxu0 %vm1804_vm4, %v1803_v27  ;;  %v959_v7 = vsel %vm499_vm3, %v2022_v46, 0.0 }
 0x568   : > { %v854_v52 = vadd.f32 %v853_v48, %v852_v37  ;;  %v1083_v53 = vadd.f32 %v1082_v51, %v1081_v47 }
 0x56a   : > { %v855_v54 = vrot.slane %v854_v52, 1  ;;  %v1084_v55 = vrot.slane %v1083_v53, 2 }
 0x56c   : > { %v856_v56 = vadd.f32 %v855_v54, %v854_v52  ;;  %v1085_v58 = vadd.f32 %v1084_v55, %v1083_v53 }
 0x56e   : > { %v1086_v59 = vrot.slane %v1085_v58, 1  ;;  %v857_v60 = vadd.f32 %v856_v56, %v1993_v57  ;;  %v1179_v57 = vmul.f32 %v1982_v50, %v1982_v50 }
 0x570   : > { %v1087_v62 = vadd.f32 %v1086_v59, %v1085_v58  ;;  %v1498_v58 = vmul.f32 %v1916_v4, %v1916_v4 }
 0x572   : > { %v1094_v0 = vsub.f32 %v857_v60, %v1087_v62  ;;  %v1499_v59 = vsub.f32 1.0, %v1498_v58 }
 0x574   : > { %v1095_v1 = vmul.f32 0.01, %v1094_v0 }
 0x576   : > { %v1096_v3 = vsub.f32 %v1933_v9, %v1095_v1 }
 0x578   : > { %v1101_v5 = vsel %vm1100_vm7, %v1997_v61, %v1096_v3  ;;  %v1180_v61 = vsub.f32 1.0, %v1179_v57  ;;  %v1268_v31 = vrot.slane %v1096_v3, %v646_v12 }
 0x579   : > { %1103 = vst.msk [vmem:[%s2095_s7] sm:$0x3] %vm1102_vm8, %v1101_v5 }
 0x5d7   : > { %v756_v6 = vpop.trf.xlu1 }
 0x5d8   : > { %1730 = vmatmul.mubr.msk.f32.vlgmr.msra.gmra.mxu1 %vm559_vm5, %v756_v6 }
 0x5d9   : > { %1738 = vmatpush3.msra.mxu1 %v1982_v50  ;;  %1739 = vmatprep.mubr.msk.f32.mxu1 %vm1804_vm4, %v1803_v27 }
 0x5da   : > { %1747 = vmatprep.subr.mxu1 %v1803_v27 }
 0x5e1   : > { %v991_v9 = vpop.trf.xlu0 }
 0x5e2   : > { %1740 = vmatmul.mubr.msk.f32.vlgmr.msra.gmra.mxu1 %vm1007_vm9, %v991_v9 }
 0x5e3   : > { %1748 = vmatpush3.xpose.msk.msra.mxu1 %vm414_vm2, %v1977_v49  ;;  %1749 = vmatprep.mubr.msk.f32.mxu1 %vm1804_vm4, %v1803_v27 }
 0x5e4   : > { %1757 = vmatprep.subr.mxu1 %v1803_v27 }
 0x5e6   : > { %1750 = vmatmul.mubr.msk.f32.vlgmr.msra.gmra.mxu1 %vm414_vm2, %v1916_v4 }
 0x5e7   : > { %1759 = vmatprep.mubr.msk.f32.mxu1 %vm1804_vm4, %v1803_v27 }
 0x625   : > { %v1175_v10 = vpop.f32.mrf.mxu0 }
 0x626   : > { %v1181_v11 = vmul.f32 %v1180_v61, %v1175_v10 }
 0x627   : > { %v1746_v13 = vpop.f32.mrf.mxu0 }
 0x628   : > { %1501 = vst.msk [vmem:[%s1889_s14] sm:$0xff] %vm414_vm2, %v1181_v11 }
 0x698   : > { %v844_v14 = vpop.f32.mrf.mxu1 }
 0x699   : > { %v845_v16 = vadd.f32 %v844_v14, %v773_v15 }
 0x69a   : > { %v1731_v8 = vpop.f32.mrf.mxu1 }
 0x6a2   : > { %v1077_v17 = vpop.f32.mrf.mxu1 }
 0x6a3   : > { %v1088_v18 = vsub.f32 %v845_v16, %v1077_v17 }
 0x6a4   : > { %v1741_v19 = vpop.f32.mrf.mxu1 }
 0x6a5   : > { %v1089_v20 = vmul.f32 0.01, %v1088_v18 }
 0x6a6   : > { %v1248_v21 = vpop.f32.mrf.mxu1 }
 0x6a7   : > { %v1091_v22 = vrot.slane %v1089_v20, 4  ;;  %v1249_v23 = vadd.f32 %v1248_v21, %v2002_v63 }
 0x6a8   : > { %v1751_v50 = vpop.f32.mrf.mxu1 }
 0x6a9   : > { %v1093_v24 = vsub.f32 %v1906_v2, %v1091_v22  ;;  %v1252_v25 = vsel %vm499_vm3, %v1249_v23, -inf }
 0x6aa   : > { %1253 = vmax.xlane.f32.xlu0 %v1252_v25 }
 0x6ab   : > { %v1098_v26 = vsel %vm1097_vm6, %v1977_v49, %v1093_v24  ;;  %v1270_v28 = vrot.slane %v1093_v24, 4 }
 0x6ac   : > { %1099 = vst.msk [vmem:[%s2094_s6] sm:$0xff] %vm414_vm2, %v1098_v26 }
 0x6ad   : > { %1753 = vmatpush3.xpose.msk.msra.mxu0 %vm414_vm2, %v1270_v28  ;;  %1758 = vmatpush3.msk.msra.mxu1 %vm1097_vm6, %v1270_v28 }
 0x6ae   : > { %1762 = vmatprep.subr.mxu0 %v1803_v27 }
 0x6b0   : > { %1755 = vmatmul.mubr.msk.f32.vlgmr.msra.gmra.mxu0 %vm414_vm2, %v1916_v4 }
 0x6b1   : > { %1763 = vmatpush3.msk.msra.mxu0 %vm1097_vm6, %v1977_v49  ;;  %1764 = vmatprep.mubr.msk.f32.mxu0 %vm1804_vm4, %v1803_v27 }
 0x733   : > { %v1254_v2 = vpop.xlane.xlu0 %1253 }
 0x734   : > { %v1255_v44 = vsub.f32 %v1249_v23, %v1254_v2 }
 0x736   : > { %v1256_v63 = vmul.f32 1.442695, %v1255_v44 }
 0x738   : > { %1791 = vpow2.f32 %v1256_v63 }
 0x745   : > { %v1792_v29 = vpop.eup %1791 }
 0x746   : > { %v1258_v30 = vsel %vm499_vm3, %v1792_v29, 0.0 }
 0x747   : > { %1259 = vadd.xlane.f32.xlu1 %v1258_v30 }
 0x770   : > { %v1339_v33 = vpop.f32.mrf.mxu0 }
 0x771   : > { %v1340_v34 = vadd.f32 %v1339_v33, %v1268_v31 }
 0x772   : > { %v1756_v36 = vpop.f32.mrf.mxu0 }
 0x7d0   : > { %v1260_v38 = vpop.xlane.xlu1 %1259 }
 0x7d1   : > { %1793 = vrcp.f32 %v1260_v38 }
 0x7de   : > { %v1794_v49 = vpop.eup %1793 }
 0x7df   : > { %v1262_v39 = vmul.f32 %v1794_v49, %v1792_v29 }
 0x7e1   : > { %v1263_v27 = vsub.f32 %v1262_v39, %v1957_v35  ;;  %v1343_v40 = vmul.f32 %v1340_v34, %v1262_v39 }
 0x7e3   : > { %v1344_v41 = vsel %vm499_vm3, %v1343_v40, 0.0  ;;  %v1264_v32 = vmul.f32 0.125, %v1263_v27 }
 0x7e4   : > { %1345 = vadd.xlane.f32.xlu0 %v1344_v41 }
 0x7e5   : > { %1760 = vmatmul.mubr.msk.f32.vlgmr.msra.gmra.mxu1 %vm499_vm3, %v1264_v32 }
 0x7e8   : > { %960 = vadd.xlane.f32.xlu0 %v959_v7 }
 0x86d   : > { %v1346_v12 = vpop.xlane.xlu0 %1345 }
 0x86e   : > { %v1347_v42 = vsub.f32 %v1340_v34, %v1346_v12 }
 0x870   : > { %v1348_v43 = vmul.f32 %v1347_v42, %v1262_v39 }
 0x871   : > { %v961_v45 = vpop.xlane.xlu0 %960 }
 0x872   : > { %v1349_v37 = vmul.f32 0.125, %v1348_v43  ;;  %v962_v47 = vsub.f32 0.0, %v961_v45 }
 0x874   : > { %v963_v48 = vrot.slane %v962_v47, 4  ;;  %1765 = vmatmul.mubr.msk.f32.vlgmr.msra.gmra.mxu0 %vm499_vm3, %v1349_v37 }
 0x876   : > { %v964_v35 = vadd.f32 %v963_v48, %v962_v47 }
 0x878   : > { %v965_v51 = vrot.slane %v964_v35, 2 }
 0x87a   : > { %v966_v52 = vadd.f32 %v965_v51, %v964_v35 }
 0x87c   : > { %v967_v53 = vrot.slane %v966_v52, 1 }
 0x87e   : > { %v968_v54 = vadd.f32 %v967_v53, %v966_v52 }
 0x880   : > { %v969_v55 = vmul.f32 0.125, %v968_v54 }
 0x882   : > { %972 = vst.msk [vmem:[%s1884_s28 + $0x8] sm:$0x1] %vm971_vm10, %v969_v55 }
 0x8a5   : > { %v1421_v46 = vpop.f32.mrf.mxu1 }
 0x8a7   : > { %v1761_v56 = vpop.f32.mrf.mxu1 }
 0x934   : > { %v1494_v60 = vpop.f32.mrf.mxu0 }
 0x935   : > { %v1495_v62 = vadd.f32 %v1494_v60, %v1421_v46 }
 0x936   : > { %v1766_v0 = vpop.f32.mrf.mxu0 }
 0x937   : > { %v1500_v1 = vmul.f32 %v1499_v59, %v1495_v62 }
 0x939   : > { %1502 = vst.msk [vmem:[%s1889_s14 + $0x8] sm:$0xff] %vm414_vm2, %v1500_v1 }
 0x93a PF: > { %s20_s30 = sadd.s32 1, %s1801_s30  }
 0x93b   : > { %p17_p5 = scmp.ge.s32.totalorder %s20_s30, 4  }
 0x93d   :  { %19 = sbr.rel (!%p17_p5) target bundleno = 1 (0x1), region = 115 }

</bundles_post_ra>
